<compile_context>
chip_gen: v5e
topology: v5e:2x2
jax: 0.10.0
libtpu: 0.0.40
codegen_flags: <defaults>
</compile_context>

<pallas_src>
import functools

import numpy as np
import jax
import jax.numpy as jnp
from jax import lax
from jax.experimental import pallas as pl
from jax.experimental.pallas import tpu as pltpu


def _round_up(x: int, m: int) -> int:
    return ((x + m - 1) // m) * m


# ----------------------------------------------------------------------------
# 1-D bilinear interpolation matrix (align_corners=True); numpy -> compile-time
# constant inside the jitted forward.
# ----------------------------------------------------------------------------
def _interp_matrix(out_size: int, in_size: int) -> np.ndarray:
    if out_size == 1:
        src = np.zeros((1,), np.float32)
    else:
        src = np.arange(out_size, dtype=np.float32) * (in_size - 1) / (out_size - 1)
    i0 = np.clip(np.floor(src).astype(np.int32), 0, in_size - 1)
    i1 = np.minimum(i0 + 1, in_size - 1)
    frac = (src - i0).astype(np.float32)
    w = np.zeros((out_size, in_size), np.float32)
    rows = np.arange(out_size)
    np.add.at(w, (rows, i0), 1.0 - frac)
    np.add.at(w, (rows, i1), frac)
    return w


# ----------------------------------------------------------------------------
# Generation-aware tuning knobs.
# ----------------------------------------------------------------------------
def _tpu_generation():
    kind = ""
    try:
        kind = jax.devices()[0].device_kind.lower()
    except Exception:
        pass
    vmem_cap = 64 * 1024 * 1024                       # conservative default (v7x)
    try:
        vmem_cap = int(pltpu.get_tpu_info().vmem_capacity_bytes)
    except Exception:
        if "v5" in kind or "v6" in kind:
            vmem_cap = 128 * 1024 * 1024
    # bf16 EUP/VPU exists on v6e / v7x only; keep f32 elsewhere (v5e has neither).
    bf16_ok = ("v6" in kind) or ("v7" in kind) or ("7x" in kind)
    exp_dtype = jnp.bfloat16 if bf16_ok else jnp.float32
    return vmem_cap, exp_dtype


def _pick_row_tile(h, b, c, w_pad, w_in, vmem_cap, exp_bytes):
    """Row-tile height: multiple of 16 (bf16 sublane packing), sized against a
    generation-aware VMEM budget, minimizing H padding; mild preference for an
    even grid so v7x's two TensorCores split the work evenly."""
    budget = max(2 * 1024 * 1024, int(vmem_cap * 0.30))
    # Dominant live bytes per output row of one grid step:
    #   pred (C,.,Wp) f32, e (C,.,Wp) exp_bytes, zh block bf16 (double-buffered),
    #   tgt/nll/prob blocks f32 (double-buffered), small (.,Wp) f32 temps.
    per_row = c * w_pad * (4 + exp_bytes) + 4 * c * w_in + 16 * w_pad * 4
    cap = (budget // per_row) // 16 * 16
    cap = max(16, min(cap, 256, _round_up(h, 16)))
    best = None
    t = 16
    while t <= cap:
        n_tiles = -(-h // t)
        pad = n_tiles * t - h
        grid_sz = b * n_tiles
        odd = 1 if (grid_sz > 1 and grid_sz % 2 == 1) else 0
        key = (pad, odd, -t)
        if best is None or key < best[0]:
            best = (key, t)
        t += 16
    return best[1]


# ----------------------------------------------------------------------------
# Fused kernel: width interpolation (single MXU matmul) + per-pixel CE terms.
# ----------------------------------------------------------------------------
def _resize_ce_kernel(ignore_index, exp_dtype, zh_ref, wwt_ref, tgt_ref,
                      nll_ref, prob_ref):
    zh = zh_ref[0]                                       # (C, TH, Win) bf16
    wwt = wwt_ref[...]                                   # (Win, Wp) bf16 (pre-cast)
    c, th, w_in = zh.shape
    w_pad = wwt.shape[1]

    # One large matmul: M = C*TH, K = Win, N = Wp.  Leading-dim reshapes are free.
    pred = lax.dot_general(
        zh.reshape(c * th, w_in), wwt,
        dimension_numbers=(((1,), (0,)), ((), ())),
        preferred_element_type=jnp.float32).reshape(c, th, w_pad)

    tgt = tgt_ref[0]                                     # (TH, Wp) int32
    valid = tgt != ignore_index
    tgt_c = jnp.where(valid, tgt, 0)                     # target * valid_mask

    # Softmax cross-entropy along the (leading, untiled) class axis.
    m = jnp.max(pred, axis=0)                            # (TH, Wp) f32
    e = jnp.exp((pred - m[None]).astype(exp_dtype))      # bf16 EUP on v6e/v7x
    se = jnp.sum(e, axis=0, dtype=jnp.float32)           # (TH, Wp) f32
    class_ids = lax.broadcasted_iota(jnp.int32, pred.shape, 0)
    sel = class_ids == tgt_c[None]
    tlogit = jnp.sum(jnp.where(sel, pred, 0.0), axis=0)  # logit at target class
    nll = m + jnp.log(se) - tlogit                       # per-pixel CE
    prob_t = jnp.exp(-nll)                               # softmax prob at target

    nll_ref[0] = nll
    prob_ref[0] = jnp.where(valid, prob_t, 1.0)          # masked_fill_(~valid, 1)


def fused_resize_ce(seg_logits, target, ignore_index):
    b, c, h_in, w_in = seg_logits.shape
    _, h, w = target.shape

    vmem_cap, exp_dtype = _tpu_generation()
    exp_bytes = 2 if exp_dtype == jnp.bfloat16 else 4

    w_pad = _round_up(w, 128)                            # lane-dense output stores
    th = _pick_row_tile(h, b, c, w_pad, w_in, vmem_cap, exp_bytes)
    h_pad = _round_up(h, th)

    # Height interpolation (small: b*C*H*Win) once in XLA at f32, cast to bf16.
    wh = jnp.asarray(_interp_matrix(h, h_in))            # (H, Hin) f32
    zh = jnp.einsum("yh,bchw->bcyw", wh, seg_logits.astype(jnp.float32))
    zh = zh.astype(jnp.bfloat16)
    if h_pad > h:
        zh = jnp.pad(zh, ((0, 0), (0, 0), (0, h_pad - h), (0, 0)))

    wwt_np = _interp_matrix(w, w_in).T                   # (Win, W)
    if w_pad > w:
        wwt_np = np.pad(wwt_np, ((0, 0), (0, w_pad - w)))
    wwt = jnp.asarray(wwt_np, dtype=jnp.bfloat16)        # pre-cast to bf16

    tgt = target.astype(jnp.int32)
    if h_pad > h or w_pad > w:
        tgt = jnp.pad(tgt, ((0, 0), (0, h_pad - h), (0, w_pad - w)),
                      constant_values=ignore_index)

    vmem_limit = max(32 * 1024 * 1024,
                     min(int(vmem_cap * 0.8), 112 * 1024 * 1024))

    kernel = functools.partial(_resize_ce_kernel, ignore_index, exp_dtype)
    nll, prob = pl.pallas_call(
        kernel,
        out_shape=(
            jax.ShapeDtypeStruct((b, h_pad, w_pad), jnp.float32),
            jax.ShapeDtypeStruct((b, h_pad, w_pad), jnp.float32),
        ),
        grid=(b, h_pad // th),
        in_specs=[
            pl.BlockSpec((1, c, th, w_in), lambda bi, ti: (bi, 0, ti, 0)),
            pl.BlockSpec((w_in, w_pad), lambda bi, ti: (0, 0)),
            pl.BlockSpec((1, th, w_pad), lambda bi, ti: (bi, ti, 0)),
        ],
        out_specs=(
            pl.BlockSpec((1, th, w_pad), lambda bi, ti: (bi, ti, 0)),
            pl.BlockSpec((1, th, w_pad), lambda bi, ti: (bi, ti, 0)),
        ),
        compiler_params=pltpu.CompilerParams(
            dimension_semantics=("parallel", "parallel"),
            vmem_limit_bytes=vmem_limit),
    )(zh, wwt, tgt)

    if h_pad > h or w_pad > w:
        nll = nll[:, :h, :w]
        prob = prob[:, :h, :w]
    return nll, prob


# ----------------------------------------------------------------------------
# Full `onece` forward: fused upsample+CE kernel, then cheap OHEM glue in JAX.
# ----------------------------------------------------------------------------
@functools.partial(jax.jit, static_argnames=("ignore_index", "thresh", "min_kept"))
def onece_forward(seg_logits, target, ignore_index=255, thresh=0.7, min_kept=10000):
    b, h, w = target.shape
    n = b * h * w

    nll_bhw, mask_prob_bhw = fused_resize_ce(seg_logits, target, ignore_index)
    nll = nll_bhw.reshape(-1)
    mask_prob = mask_prob_bhw.reshape(-1)                # invalid pixels already = 1

    tgt_flat = target.reshape(-1).astype(jnp.int32)
    valid = tgt_flat != ignore_index
    num_valid = jnp.sum(valid.astype(jnp.int32))

    # OHEM threshold: k-th smallest masked prob.  approx_min_k is TPU-native and
    # far cheaper than an exact sort / top_k; the threshold only needs ~1e-3.
    k = min(n, int(min_kept))
    if k >= n:
        thr_val = jnp.max(mask_prob)
    else:
        vals, _ = lax.approx_min_k(mask_prob, k)
        thr_val = jnp.max(vals)
    threshold = jnp.maximum(thr_val, jnp.float32(thresh))
    kept = mask_prob <= threshold

    # TODO(synk): torch prints 'Labels: {num_valid}' when min_kept > num_valid;
    # the data-dependent host print is skipped here.
    do_ohem = jnp.logical_and(num_valid > 0, jnp.int32(min_kept) <= num_valid)
    final_valid = jnp.where(do_ohem, jnp.logical_and(valid, kept), valid)

    vmask = final_valid.astype(jnp.float32)
    # If every pixel is ignored this is 0/0 = NaN, matching torch's mean over an
    # empty set of non-ignored pixels.
    return jnp.sum(nll * vmask) / jnp.sum(vmask)


# ----------------------------------------------------------------------------
# Pure-JAX reference (f32) for a tolerance check.
# ----------------------------------------------------------------------------
def _reference_loss(seg, target, ignore_index=255, thresh=0.7, min_kept=10000):
    b, c, h_in, w_in = seg.shape
    _, h, w = target.shape
    wh = jnp.asarray(_interp_matrix(h, h_in))
    ww = jnp.asarray(_interp_matrix(w, w_in))
    pred = jnp.einsum("yh,bchw,xw->bcyx", wh, seg.astype(jnp.float32), ww)
    logits = pred.transpose(1, 0, 2, 3).reshape(c, -1)
    tgt = target.reshape(-1).astype(jnp.int32)
    valid = tgt != ignore_index
    tgt_c = jnp.where(valid, tgt, 0)
    logp = jax.nn.log_softmax(logits, axis=0)
    nll = -jnp.take_along_axis(logp, tgt_c[None, :], axis=0)[0]
    prob_t = jnp.exp(-nll)
    mask_prob = jnp.where(valid, prob_t, 1.0)
    n = tgt.shape[0]
    k = min(n, int(min_kept))
    thr_val = jnp.sort(mask_prob)[k - 1]
    threshold = jnp.maximum(thr_val, jnp.float32(thresh))
    kept = mask_prob <= threshold
    num_valid = jnp.sum(valid.astype(jnp.int32))
    do_ohem = jnp.logical_and(num_valid > 0, jnp.int32(min_kept) <= num_valid)
    fv = jnp.where(do_ohem, jnp.logical_and(valid, kept), valid).astype(jnp.float32)
    return jnp.sum(nll * fv) / jnp.sum(fv)


if __name__ == "__main__":
    key = jax.random.PRNGKey(0)
    k1, k2, k3 = jax.random.split(key, 3)

    b, c = 2, 4
    h_in, w_in = 8, 8        # low-res seg logits
    h, w = 16, 16            # target resolution

    seg = jax.random.normal(k1, (b, c, h_in, w_in), dtype=jnp.float32)
    target = jax.random.randint(k2, (b, h, w), 0, c, dtype=jnp.int32)
    # sprinkle some ignore_index labels
    ign = jax.random.bernoulli(k3, 0.1, (b, h, w))
    target = jnp.where(ign, jnp.int32(255), target)

    loss = onece_forward(seg, target, ignore_index=255, thresh=0.7, min_kept=10000)
    jax.block_until_ready(loss)
    assert jnp.isfinite(loss)

    ref = _reference_loss(seg, target, ignore_index=255, thresh=0.7, min_kept=10000)
    assert jnp.allclose(loss, ref, rtol=5e-2, atol=5e-2), (float(loss), float(ref))

    print("KERNEL_OK")
</pallas_src>

<mosaic_0001>
module attributes {stable_mosaic.version = 11 : i64} {
  func.func @_resize_ce_kernel(%arg0: i32, %arg1: i32, %arg2: memref<1x4x16x8xbf16, #tpu.memory_space<vmem>>, %arg3: memref<8x128xbf16, #tpu.memory_space<vmem>>, %arg4: memref<1x16x128xi32, #tpu.memory_space<vmem>>, %arg5: memref<1x16x128xf32, #tpu.memory_space<vmem>>, %arg6: memref<1x16x128xf32, #tpu.memory_space<vmem>>) attributes {dimension_semantics = [#tpu.dimension_semantics<parallel>, #tpu.dimension_semantics<parallel>], iteration_bounds = array<i64: 2, 1>, scalar_prefetch = 0 : i64, scratch_operands = 0 : i64, tpu.core_type = #tpu.core_type<tc>, window_params = [{transform_indices = @transform_0, window_bounds = array<i64: 1, 4, 16, 8>}, {pipeline_mode = #tpu.pipeline_mode<synchronous>, transform_indices = @transform_1, window_bounds = array<i64: 8, 128>}, {transform_indices = @transform_2, window_bounds = array<i64: 1, 16, 128>}, {transform_indices = @transform_3, window_bounds = array<i64: 1, 16, 128>}, {transform_indices = @transform_4, window_bounds = array<i64: 1, 16, 128>}]} {
    %c0 = arith.constant 0 : index
    %c0_0 = arith.constant 0 : index
    %c0_1 = arith.constant 0 : index
    %c0_2 = arith.constant 0 : index
    %0 = vector.load %arg2[%c0, %c0_0, %c0_1, %c0_2] : memref<1x4x16x8xbf16, #tpu.memory_space<vmem>>, vector<1x4x16x8xbf16>
    %1 = vector.shape_cast %0 : vector<1x4x16x8xbf16> to vector<4x16x8xbf16>
    %c0_3 = arith.constant 0 : index
    %c0_4 = arith.constant 0 : index
    %2 = vector.load %arg3[%c0_3, %c0_4] : memref<8x128xbf16, #tpu.memory_space<vmem>>, vector<8x128xbf16>
    %3 = vector.shape_cast %1 : vector<4x16x8xbf16> to vector<64x8xbf16>
    %cst = arith.constant dense<0.000000e+00> : vector<64x128xf32>
    %4 = tpu.matmul %3, %2, %cst {dimension_numbers = #tpu.dot_dimension_numbers<[1], [0], [0], [1], [0, 0, 1, 1], [], []>} : vector<64x8xbf16>, vector<8x128xbf16>, vector<64x128xf32> -> vector<64x128xf32>
    %5 = vector.shape_cast %4 : vector<64x128xf32> to vector<4x16x128xf32>
    %c0_5 = arith.constant 0 : index
    %c0_6 = arith.constant 0 : index
    %c0_7 = arith.constant 0 : index
    %6 = vector.load %arg4[%c0_5, %c0_6, %c0_7] : memref<1x16x128xi32, #tpu.memory_space<vmem>>, vector<1x16x128xi32>
    %7 = vector.shape_cast %6 : vector<1x16x128xi32> to vector<16x128xi32>
    %c255_i32 = arith.constant 255 : i32
    %8 = vector.broadcast %c255_i32 : i32 to vector<16x128xi32>
    %9 = arith.cmpi ne, %7, %8 : vector<16x128xi32>
    %c0_i32 = arith.constant 0 : i32
    %10 = vector.broadcast %c0_i32 : i32 to vector<16x128xi32>
    %11 = arith.select %9, %7, %10 : vector<16x128xi1>, vector<16x128xi32>
    %cst_8 = arith.constant dense<0xFF800000> : vector<16x128xf32>
    %12 = vector.multi_reduction <maximumf>, %5, %cst_8 [0] : vector<4x16x128xf32> to vector<16x128xf32>
    %13 = vector.shape_cast %12 : vector<16x128xf32> to vector<1x16x128xf32>
    %14 = vector.broadcast %13 : vector<1x16x128xf32> to vector<4x16x128xf32>
    %15 = arith.subf %5, %14 : vector<4x16x128xf32>
    %16 = math.exp %15 : vector<4x16x128xf32>
    %cst_9 = arith.constant dense<0.000000e+00> : vector<16x128xf32>
    %17 = vector.multi_reduction <add>, %16, %cst_9 [0] : vector<4x16x128xf32> to vector<16x128xf32>
    %18 = tpu.iota {dimensions = array<i32: 0>} : vector<4x16x128xi32>
    %19 = vector.shape_cast %11 : vector<16x128xi32> to vector<1x16x128xi32>
    %20 = vector.broadcast %19 : vector<1x16x128xi32> to vector<4x16x128xi32>
    %21 = arith.cmpi eq, %18, %20 : vector<4x16x128xi32>
    %cst_10 = arith.constant 0.000000e+00 : f32
    %22 = vector.broadcast %cst_10 : f32 to vector<4x16x128xf32>
    %23 = arith.select %21, %5, %22 : vector<4x16x128xi1>, vector<4x16x128xf32>
    %cst_11 = arith.constant dense<0.000000e+00> : vector<16x128xf32>
    %24 = vector.multi_reduction <add>, %23, %cst_11 [0] : vector<4x16x128xf32> to vector<16x128xf32>
    %25 = math.log %17 : vector<16x128xf32>
    %26 = arith.addf %12, %25 : vector<16x128xf32>
    %27 = arith.subf %26, %24 : vector<16x128xf32>
    %cst_12 = arith.constant 0.000000e+00 : f32
    %28 = vector.broadcast %cst_12 : f32 to vector<16x128xf32>
    %29 = arith.subf %28, %27 : vector<16x128xf32>
    %30 = math.exp %29 : vector<16x128xf32>
    %c0_13 = arith.constant 0 : index
    %c0_14 = arith.constant 0 : index
    %c0_15 = arith.constant 0 : index
    %31 = vector.load %arg5[%c0_13, %c0_14, %c0_15] : memref<1x16x128xf32, #tpu.memory_space<vmem>>, vector<1x16x128xf32>
    %32 = vector.shape_cast %31 : vector<1x16x128xf32> to vector<16x128xf32>
    %33 = vector.shape_cast %27 : vector<16x128xf32> to vector<1x16x128xf32>
    tpu.vector_store %arg5[%c0_13, %c0_14, %c0_15], %33 {strides = array<i32>} : memref<1x16x128xf32, #tpu.memory_space<vmem>>, vector<1x16x128xf32>,
    %cst_16 = arith.constant 1.000000e+00 : f32
    %34 = vector.broadcast %cst_16 : f32 to vector<16x128xf32>
    %35 = arith.select %9, %30, %34 : vector<16x128xi1>, vector<16x128xf32>
    %c0_17 = arith.constant 0 : index
    %c0_18 = arith.constant 0 : index
    %c0_19 = arith.constant 0 : index
    %36 = vector.load %arg6[%c0_17, %c0_18, %c0_19] : memref<1x16x128xf32, #tpu.memory_space<vmem>>, vector<1x16x128xf32>
    %37 = vector.shape_cast %36 : vector<1x16x128xf32> to vector<16x128xf32>
    %38 = vector.shape_cast %35 : vector<16x128xf32> to vector<1x16x128xf32>
    tpu.vector_store %arg6[%c0_17, %c0_18, %c0_19], %38 {strides = array<i32>} : memref<1x16x128xf32, #tpu.memory_space<vmem>>, vector<1x16x128xf32>,
    return
  }
  func.func @transform_0(%arg0: i32, %arg1: i32) -> (i32, i32, i32, i32) {
    %c0_i32 = arith.constant 0 : i32
    %c0_i32_0 = arith.constant 0 : i32
    %c0_i32_1 = arith.constant 0 : i32
    return %arg0, %c0_i32, %arg1, %c0_i32_0 : i32, i32, i32, i32
  }
  func.func @transform_1(%arg0: i32, %arg1: i32) -> (i32, i32) {
    %c0_i32 = arith.constant 0 : i32
    %c0_i32_0 = arith.constant 0 : i32
    %c0_i32_1 = arith.constant 0 : i32
    return %c0_i32, %c0_i32_0 : i32, i32
  }
  func.func @transform_2(%arg0: i32, %arg1: i32) -> (i32, i32, i32) {
    %c0_i32 = arith.constant 0 : i32
    %c0_i32_0 = arith.constant 0 : i32
    return %arg0, %arg1, %c0_i32 : i32, i32, i32
  }
  func.func @transform_3(%arg0: i32, %arg1: i32) -> (i32, i32, i32) {
    %c0_i32 = arith.constant 0 : i32
    %c0_i32_0 = arith.constant 0 : i32
    return %arg0, %arg1, %c0_i32 : i32, i32, i32
  }
  func.func @transform_4(%arg0: i32, %arg1: i32) -> (i32, i32, i32) {
    %c0_i32 = arith.constant 0 : i32
    %c0_i32_0 = arith.constant 0 : i32
    return %arg0, %arg1, %c0_i32 : i32, i32, i32
  }
}

</mosaic_0001>

<bundles_post_ra>
// kernel: onece_forward.1
= control target key start
LH: loop header
LB: loop body
LE: loop exit
PB: predicated region body
PF: predicated region fallthrough
CT: control target
= control target key end

     0   :  { %s755_s15 = smov 0   ;;  %s757_s16 = smov 0   ;;  %s845_s0 = inlined_call_operand.vmem [shape: bf16[2,4,16,8], index: 0, kind: input, shape index: {}]   ;;  %s846_s1 = inlined_call_operand.vmem [shape: bf16[8,128], index: 1, kind: input, shape index: {}]   ;;  %s847_s2 = inlined_call_operand.vmem [shape: s32[2,16,128], index: 2, kind: input, shape index: {}]   ;;  %s848_s3 = inlined_call_operand.vmem [shape: f32[2,16,128], index: 3, kind: output, shape index: {0}]   ;;  %s849_s4 = inlined_call_operand.vmem [shape: f32[2,16,128], index: 4, kind: output, shape index: {1}]  }
   0x1   :  { %s759_s17 = smov 0  }
   0x2 LB: > { %s27_s18 = sadd.s32 1, %s724_s16  ;;  %p616_p0 = scmp.ge.s32.totalorder %s728_s17, 1  ;;  %s728_s17 = sphi %s759_s17, %s15_s17   ;;  %s724_s16 = sphi %s757_s16, %s851_s16   ;;  %s720_s15 = sphi %s755_s15, %s850_s15  }
   0x3   : > { %p29_p1 = scmp.ge.s32.totalorder %s27_s18, 2  ;;  %p205_p2 = scmp.lt.s32.totalorder %s728_s17, 3 }
   0x5   : > { %s853_s18 = smov (%p29_p1, %s27_s18), 0  ;;  %p206_p3 = pnand %p616_p0, %p205_p2 }
   0x6   : > { %p258_p4 = scmp.lt.s32.totalorder (!%p206_p3), %s720_s15, 1 }
   0x7   : > { %209 = sbr.rel (%p206_p3) target bundleno = 206 (0xce), region = 32 }
   0xc   : > { %v306_v0 = vld [vmem:[%s846_s1] sm:$0xf]  ;;  %vm340_vm0 = vcmask 1043456   ;;  %s855_s15 = smov (!%p258_p4, %s720_s15), 1  ;;  %vm327_vm1 = vcmask 64512  }
   0xd   : > { %v342_v1 = vsel %vm340_vm0, %v306_v0, 0  ;;  %s647_s21 = sshll.u32 %s855_s15, 5  ;;  %s782_s25 = sshll.u32 %s855_s15, 4 }
   0xe   : > { %351 = vmatpush.bf16.msra.mxu0 %v342_v1  ;;  %655 = vmatpush.bf16.msra.mxu1 %v342_v1  ;;  %s265_s24 = scalar_lea.vmem %s845_s0, %s647_s21  ;;  %s793_s28 = scalar_lea.vmem %s847_s2, %s782_s25 }
   0xf   : > { %656 = vmatpush.bf16.msra.mxu2 %v342_v1  ;;  %657 = vmatpush.bf16.msra.mxu3 %v342_v1  ;;  %v651_v2 = vld [vmem:[%s265_s24] sm:$0xff]  ;;  %v652_v3 = vld [vmem:[%s265_s24 + $0x8] sm:$0xff]  ;;  %v653_v4 = vld [vmem:[%s265_s24 + $0x10] sm:$0xff]  ;;  %s285_s5 = scalar_lea.vmem %s848_s3, %s782_s25  ;;  %s295_s8 = scalar_lea.vmem %s849_s4, %s782_s25 }
  0x10   : > { %v654_v5 = vld [vmem:[%s265_s24 + $0x18] sm:$0xff]  ;;  %v802_v24 = vld [vmem:[%s793_s28] sm:$0xff]  ;;  %v374_v43 = vld [vmem:[%s793_s28 + $0x8] sm:$0xff] }
  0x11   : > { %641 = vmatmul.msk.bf16.vlgmr.msra.gmra.mxu0 %vm327_vm1, %v651_v2  ;;  %642 = vmatmul.msk.bf16.vlgmr.msra.gmra.mxu1 %vm327_vm1, %v652_v3  ;;  %vm375_vm2 = vcmp.ne.s32.totalorder %v802_v24, 255  ;;  %vm376_vm6 = vcmp.ne.s32.totalorder %v374_v43, 255 }
  0x12   : > { %643 = vmatmul.msk.bf16.vlgmr.msra.gmra.mxu2 %vm327_vm1, %v653_v4  ;;  %644 = vmatmul.msk.bf16.vlgmr.msra.gmra.mxu3 %vm327_vm1, %v654_v5  ;;  %v377_v34 = vsel %vm375_vm2, %v802_v24, 0  ;;  %v378_v52 = vsel %vm376_vm6, %v374_v43, 0 }
  0x13   : > { %vm415_vm3 = vcmp.eq.s32.totalorder %v377_v34, 0  ;;  %vm417_vm4 = vcmp.eq.s32.totalorder %v377_v34, 1  ;;  %vm419_vm5 = vcmp.eq.s32.totalorder %v377_v34, 2  ;;  %vm421_vm7 = vcmp.eq.s32.totalorder %v377_v34, 3 }
  0x14   : > { %vm416_vm8 = vcmp.eq.s32.totalorder %v378_v52, 0  ;;  %vm418_vm9 = vcmp.eq.s32.totalorder %v378_v52, 1  ;;  %vm420_vm10 = vcmp.eq.s32.totalorder %v378_v52, 2  ;;  %vm422_vm11 = vcmp.eq.s32.totalorder %v378_v52, 3 }
  0x8e   : > { %v353_v6 = vpop.f32.mrf.mxu0  ;;  %v358_v7 = vpop.f32.mrf.mxu1 }
  0x8f   : > { %v423_v45 = vsel %vm415_vm3, %v353_v6, 0.0  ;;  %v425_v46 = vsel %vm417_vm4, %v358_v7, 0.0 }
  0x90   : > { %v431_v50 = vadd.f32 %v425_v46, %v423_v45 }
  0x95   : > { %v363_v8 = vpop.f32.mrf.mxu2  ;;  %v779_v9 = vpop.f32.mrf.mxu3 }
  0x96   : > { %v379_v10 = vmax.f32 %v353_v6, %v363_v8  ;;  %v380_v11 = vmax.f32 %v358_v7, %v779_v9  ;;  %v355_v19 = vpop.f32.mrf.mxu0  ;;  %v360_v20 = vpop.f32.mrf.mxu1  ;;  %v427_v51 = vsel %vm419_vm5, %v363_v8, 0.0  ;;  %v429_v61 = vsel %vm421_vm7, %v779_v9, 0.0 }
  0x97   : > { %v432_v57 = vadd.f32 %v431_v50, %v427_v51  ;;  %v424_v62 = vsel %vm416_vm8, %v355_v19, 0.0  ;;  %v426_v63 = vsel %vm418_vm9, %v360_v20, 0.0 }
  0x98   : > { %v784_v12 = vmax.f32 %v379_v10, %v380_v11  ;;  %v434_v4 = vadd.f32 %v426_v63, %v424_v62 }
  0x99   : > { %v433_v0 = vadd.f32 %v432_v57, %v429_v61 }
  0x9a   : > { %v385_v13 = vsub.f32 %v353_v6, %v784_v12  ;;  %v387_v14 = vsub.f32 %v358_v7, %v784_v12  ;;  %v389_v15 = vsub.f32 %v363_v8, %v784_v12  ;;  %v391_v16 = vsub.f32 %v779_v9, %v784_v12 }
  0x9c   : > { %v393_v17 = vmul.f32 1.442695, %v385_v13  ;;  %v397_v18 = vmul.f32 1.442695, %v387_v14  ;;  %v401_v21 = vmul.f32 1.442695, %v389_v15 }
  0x9d   : > { %v797_v22 = vpop.f32.mrf.mxu2  ;;  %v799_v23 = vpop.f32.mrf.mxu3  ;;  %v405_v27 = vmul.f32 1.442695, %v391_v16 }
  0x9e   : > { %682 = vpow2.f32 %v393_v17  ;;  %v382_v25 = vmax.f32 %v355_v19, %v797_v22  ;;  %v383_v26 = vmax.f32 %v360_v20, %v799_v23  ;;  %v428_v2 = vsel %vm420_vm10, %v797_v22, 0.0 }
  0x9f   : > { %684 = vpow2.f32 %v397_v18  ;;  %v435_v6 = vadd.f32 %v434_v4, %v428_v2  ;;  %v430_v10 = vsel %vm422_vm11, %v799_v23, 0.0 }
  0xa0   : > { %v806_v28 = vmax.f32 %v382_v25, %v383_v26  ;;  %686 = vpow2.f32 %v401_v21 }
  0xa1   : > { %688 = vpow2.f32 %v405_v27  ;;  %v436_v11 = vadd.f32 %v435_v6, %v430_v10 }
  0xa2   : > { %v386_v29 = vsub.f32 %v355_v19, %v806_v28  ;;  %v388_v30 = vsub.f32 %v360_v20, %v806_v28  ;;  %v390_v31 = vsub.f32 %v797_v22, %v806_v28  ;;  %v392_v32 = vsub.f32 %v799_v23, %v806_v28 }
  0xa4   : > { %v683_v33 = vpop.eup %682  ;;  %v395_v35 = vmul.f32 1.442695, %v386_v29  ;;  %v399_v36 = vmul.f32 1.442695, %v388_v30  ;;  %v403_v38 = vmul.f32 1.442695, %v390_v31 }
  0xa5   : > { %v685_v37 = vpop.eup %684  ;;  %v407_v41 = vmul.f32 1.442695, %v392_v32 }
  0xa6   : > { %v409_v39 = vadd.f32 %v685_v37, %v683_v33  ;;  %690 = vpow2.f32 %v395_v35  ;;  %v687_v40 = vpop.eup %686 }
  0xa7   : > { %692 = vpow2.f32 %v399_v36  ;;  %v689_v44 = vpop.eup %688 }
  0xa8   : > { %v410_v42 = vadd.f32 %v687_v40, %v409_v39  ;;  %694 = vpow2.f32 %v403_v38 }
  0xa9   : > { %696 = vpow2.f32 %v407_v41 }
  0xaa   : > { %v411_v47 = vadd.f32 %v689_v44, %v410_v42 }
  0xac   : > { %v691_v48 = vpop.eup %690  ;;  %698 = vlog2.f32 %v411_v47 }
  0xad   : > { %v693_v49 = vpop.eup %692 }
  0xae   : > { %v412_v53 = vadd.f32 %v693_v49, %v691_v48  ;;  %v695_v54 = vpop.eup %694 }
  0xaf   : > { %v697_v56 = vpop.eup %696 }
  0xb0   : > { %v413_v55 = vadd.f32 %v695_v54, %v412_v53 }
  0xb2   : > { %v699_v58 = vpop.eup %698  ;;  %v414_v59 = vadd.f32 %v697_v56, %v413_v55 }
  0xb3   : > { %v438_v60 = vmul.f32 0.6931472, %v699_v58 }
  0xb4   : > { %700 = vlog2.f32 %v414_v59 }
  0xb5   : > { %v441_v1 = vadd.f32 %v438_v60, %v784_v12 }
  0xb7   : > { %v443_v3 = vsub.f32 %v441_v1, %v433_v0 }
  0xb9   : > { %v445_v5 = vsub.f32 0.0, %v443_v3  ;;  %451 = vst [vmem:[%s285_s5] sm:$0xff] %v443_v3 }
  0xba   : > { %v701_v7 = vpop.eup %700 }
  0xbb   : > { %v447_v8 = vmul.f32 1.442695, %v445_v5  ;;  %v440_v9 = vmul.f32 0.6931472, %v701_v7 }
  0xbd   : > { %702 = vpow2.f32 %v447_v8  ;;  %v442_v12 = vadd.f32 %v440_v9, %v806_v28 }
  0xbf   : > { %v444_v13 = vsub.f32 %v442_v12, %v436_v11 }
  0xc1   : > { %v446_v14 = vsub.f32 0.0, %v444_v13  ;;  %452 = vst [vmem:[%s285_s5 + $0x8] sm:$0xff] %v444_v13 }
  0xc3   : > { %v703_v15 = vpop.eup %702  ;;  %v449_v16 = vmul.f32 1.442695, %v446_v14 }
  0xc4   : > { %v453_v17 = vsel %vm375_vm2, %v703_v15, 1.0 }
  0xc5   : > { %455 = vst [vmem:[%s295_s8] sm:$0xff] %v453_v17  ;;  %704 = vpow2.f32 %v449_v16 }
  0xcb   : > { %v705_v18 = vpop.eup %704 }
  0xcc   : > { %v454_v19 = vsel %vm376_vm6, %v705_v18, 1.0 }
  0xcd   : > { %456 = vst [vmem:[%s295_s8 + $0x8] sm:$0xff] %v454_v19 }
  0xce PF: > { %s15_s17 = sadd.s32 1, %s728_s17   ;;  %s850_s15 = smov %s724_s16 }
  0xcf   : > { %p12_p5 = scmp.ge.s32.totalorder %s15_s17, 4   ;;  %s851_s16 = smov %s853_s18 }
  0xd1   :  { %14 = sbr.rel (!%p12_p5) target bundleno = 2 (0x2), region = 77 }

</bundles_post_ra>
